<compile_context>
chip_gen: v7x
topology: tpu7x:2x2x1
jax: 0.10.0
libtpu: 0.0.40
codegen_flags: <defaults>
</compile_context>

<pallas_src>
import functools

import jax
import jax.numpy as jnp
from jax import lax
from jax.experimental import pallas as pl
from jax.experimental.pallas import tpu as pltpu

_VMEM_LIMIT = 32 * 1024 * 1024


def _round_up(x, m):
    return ((x + m - 1) // m) * m


def _pick_m_tiling(M, tm_max=128):
    """Pick an M tile (multiple of 16 for bf16 packing) and the padded M."""
    tm = min(tm_max, _round_up(M, 16))
    Mp = _round_up(M, tm)
    return tm, Mp


# ----------------------------------------------------------------------------
# Pallas kernels
# ----------------------------------------------------------------------------
def _mm_bias_kernel(x_ref, w_ref, b_ref, o_ref):
    # x: [tm, K] bf16, w: [K, tn] bf16, b: [1, tn] f32 -> o: [tm, tn]
    acc = jnp.dot(x_ref[...], w_ref[...], preferred_element_type=jnp.float32)
    o_ref[...] = (acc + b_ref[...]).astype(o_ref.dtype)


def _gated_mlp_kernel(x_ref, w1_ref, w3_ref, o_ref):
    # silu((x @ w1) * (x @ w3)) -- matches F.silu(linear1(x) * linear3(x))
    a = jnp.dot(x_ref[...], w1_ref[...], preferred_element_type=jnp.float32)
    g = jnp.dot(x_ref[...], w3_ref[...], preferred_element_type=jnp.float32)
    h = a * g
    o_ref[...] = jax.nn.silu(h).astype(o_ref.dtype)


def _rmsnorm_kernel(x_ref, w_ref, o_ref, *, eps):
    x = x_ref[...].astype(jnp.float32)
    ms = jnp.mean(x * x, axis=-1, keepdims=True)
    o_ref[...] = (x * lax.rsqrt(ms + eps) * w_ref[...]).astype(o_ref.dtype)


def _attn_kernel(q_ref, k_ref, v_ref, o_ref, *, scale):
    # One (batch*head) slice per grid step: blocks are [1, L, d].
    q = q_ref[...]
    k = k_ref[...]
    v = v_ref[...]
    s = jnp.einsum("bqd,bkd->bqk", q, k,
                   preferred_element_type=jnp.float32) * scale
    L = s.shape[1]
    rows = lax.broadcasted_iota(jnp.int32, (1, L, L), 1)
    cols = lax.broadcasted_iota(jnp.int32, (1, L, L), 2)
    s = jnp.where(cols <= rows, s, -1e30)           # causal mask
    m = jnp.max(s, axis=-1, keepdims=True)
    p = jnp.exp(s - m)
    denom = jnp.sum(p, axis=-1, keepdims=True)
    o = jnp.einsum("bqk,bkd->bqd", p.astype(v.dtype), v,
                   preferred_element_type=jnp.float32)
    o_ref[...] = (o / denom).astype(o_ref.dtype)


# ----------------------------------------------------------------------------
# Pallas wrappers
# ----------------------------------------------------------------------------
def pallas_linear(x, w, bias=None, out_dtype=jnp.float32):
    """y = x @ w (+ bias); bf16 inputs, f32 MXU accumulation, tiled (M, N) grid."""
    M, K = x.shape
    _, N = w.shape
    tm, Mp = _pick_m_tiling(M)
    tn = 128
    Np = _round_up(N, tn)

    xb = jnp.pad(x.astype(jnp.bfloat16), ((0, Mp - M), (0, 0)))
    wb = jnp.pad(w.astype(jnp.bfloat16), ((0, 0), (0, Np - N)))
    if bias is None:
        bb = jnp.zeros((1, Np), jnp.float32)
    else:
        bb = jnp.pad(bias.astype(jnp.float32), (0, Np - N)).reshape(1, Np)

    out = pl.pallas_call(
        _mm_bias_kernel,
        out_shape=jax.ShapeDtypeStruct((Mp, Np), out_dtype),
        grid_spec=pl.GridSpec(
            grid=(Mp // tm, Np // tn),
            in_specs=[
                pl.BlockSpec((tm, K), lambda i, j: (i, 0)),
                pl.BlockSpec((K, tn), lambda i, j: (0, j)),
                pl.BlockSpec((1, tn), lambda i, j: (0, j)),   # bias: per-N-tile only
            ],
            out_specs=pl.BlockSpec((tm, tn), lambda i, j: (i, j)),
        ),
        compiler_params=pltpu.CompilerParams(
            dimension_semantics=("parallel", "parallel"),
            vmem_limit_bytes=_VMEM_LIMIT,
        ),
    )(xb, wb, bb)
    return out[:M, :N]


def pallas_gated_mlp(x, w1, w3):
    """silu((x @ w1) * (x @ w3)) with the same tiling scheme as pallas_linear."""
    M, K = x.shape
    _, N = w1.shape
    tm, Mp = _pick_m_tiling(M)
    tn = 128
    Np = _round_up(N, tn)

    xb = jnp.pad(x.astype(jnp.bfloat16), ((0, Mp - M), (0, 0)))
    w1b = jnp.pad(w1.astype(jnp.bfloat16), ((0, 0), (0, Np - N)))
    w3b = jnp.pad(w3.astype(jnp.bfloat16), ((0, 0), (0, Np - N)))

    out = pl.pallas_call(
        _gated_mlp_kernel,
        out_shape=jax.ShapeDtypeStruct((Mp, Np), jnp.bfloat16),
        grid_spec=pl.GridSpec(
            grid=(Mp // tm, Np // tn),
            in_specs=[
                pl.BlockSpec((tm, K), lambda i, j: (i, 0)),
                pl.BlockSpec((K, tn), lambda i, j: (0, j)),
                pl.BlockSpec((K, tn), lambda i, j: (0, j)),
            ],
            out_specs=pl.BlockSpec((tm, tn), lambda i, j: (i, j)),
        ),
        compiler_params=pltpu.CompilerParams(
            dimension_semantics=("parallel", "parallel"),
            vmem_limit_bytes=_VMEM_LIMIT,
        ),
    )(xb, w1b, w3b)
    return out[:M, :N]


def pallas_rmsnorm(x, w, eps):
    """RMSNorm over the last dim of a 2-D [M, D] array."""
    M, D = x.shape
    tm, Mp = _pick_m_tiling(M)
    xp = jnp.pad(x.astype(jnp.float32), ((0, Mp - M), (0, 0)))
    w2 = w.reshape(1, D).astype(jnp.float32)

    out = pl.pallas_call(
        functools.partial(_rmsnorm_kernel, eps=eps),
        out_shape=jax.ShapeDtypeStruct((Mp, D), jnp.float32),
        grid_spec=pl.GridSpec(
            grid=(Mp // tm,),
            in_specs=[
                pl.BlockSpec((tm, D), lambda i: (i, 0)),
                pl.BlockSpec((1, D), lambda i: (0, 0)),
            ],
            out_specs=pl.BlockSpec((tm, D), lambda i: (i, 0)),
        ),
        compiler_params=pltpu.CompilerParams(
            dimension_semantics=("parallel",),
            vmem_limit_bytes=_VMEM_LIMIT,
        ),
    )(xp, w2)
    return out[:M]


def pallas_attention(q, k, v, scale):
    """Causal scaled-dot-product attention, grid over batch*heads. q,k,v: [B,H,L,d]."""
    B, H, L, d = q.shape
    BH = B * H
    qf = q.reshape(BH, L, d).astype(jnp.bfloat16)
    kf = k.reshape(BH, L, d).astype(jnp.bfloat16)
    vf = v.reshape(BH, L, d).astype(jnp.bfloat16)

    out = pl.pallas_call(
        functools.partial(_attn_kernel, scale=scale),
        out_shape=jax.ShapeDtypeStruct((BH, L, d), jnp.float32),
        grid_spec=pl.GridSpec(
            grid=(BH,),
            in_specs=[pl.BlockSpec((1, L, d), lambda i: (i, 0, 0))] * 3,
            out_specs=pl.BlockSpec((1, L, d), lambda i: (i, 0, 0)),
        ),
        compiler_params=pltpu.CompilerParams(
            dimension_semantics=("parallel",),
            vmem_limit_bytes=_VMEM_LIMIT,
        ),
    )(qf, kf, vf)
    return out.reshape(B, H, L, d)


# ----------------------------------------------------------------------------
# Plain-JAX reference implementations (f32) of the same primitives
# ----------------------------------------------------------------------------
def ref_linear(x, w, bias=None, out_dtype=jnp.float32):
    y = jnp.dot(x.astype(jnp.float32), w.astype(jnp.float32))
    if bias is not None:
        y = y + bias.astype(jnp.float32)
    return y.astype(out_dtype)


def ref_gated_mlp(x, w1, w3):
    xf = x.astype(jnp.float32)
    return jax.nn.silu(jnp.dot(xf, w1) * jnp.dot(xf, w3))


def ref_rmsnorm(x, w, eps):
    xf = x.astype(jnp.float32)
    ms = jnp.mean(xf * xf, axis=-1, keepdims=True)
    return xf * lax.rsqrt(ms + eps) * w


def ref_attention(q, k, v, scale):
    s = jnp.einsum("bhqd,bhkd->bhqk", q, k) * scale
    L = q.shape[2]
    mask = jnp.tril(jnp.ones((L, L), dtype=bool))
    s = jnp.where(mask, s, -jnp.inf)
    p = jax.nn.softmax(s, axis=-1)
    return jnp.einsum("bhqk,bhkd->bhqd", p, v)


# ----------------------------------------------------------------------------
# Model: parameters + forward
# ----------------------------------------------------------------------------
def _make_pos_embedding(max_seq_len, hidden_size):
    inv_freq = 1.0 / (10000.0 ** (
        jnp.arange(0, hidden_size, 2, dtype=jnp.float32) / hidden_size))
    pos = jnp.arange(max_seq_len, dtype=jnp.float32)
    sincos = jnp.einsum("i,j->ij", pos, inv_freq)
    emb = jnp.concatenate([jnp.sin(sincos), jnp.cos(sincos)], axis=-1)
    return emb[None]  # [1, max_pos, hidden]


def init_params(key, cfg):
    D, Dt = cfg["hidden"], cfg["temporal_hidden"]
    V, C, nac = cfg["vocab"], cfg["codebook"], cfg["n_ac"]
    keys = iter(jax.random.split(key, 5 * cfg["layers"] + 8))
    scale = 0.02

    def rnd(shape):
        return jax.random.normal(next(keys), shape, jnp.float32) * scale

    layers = []
    for _ in range(cfg["layers"]):
        layers.append(dict(
            attn_norm=jnp.ones((D,), jnp.float32),
            mlp_norm=jnp.ones((D,), jnp.float32),
            wqkv=rnd((D, 3 * D)),       # fused q/k/v projection
            wo=rnd((D, D)),
            w1=rnd((D, 4 * D)),
            w3=rnd((D, 4 * D)),
            w2=rnd((4 * D, D)),
        ))
    return dict(
        w_in=rnd((Dt, D)),
        pos_emb=_make_pos_embedding(cfg["max_pos"], D),
        layers=layers,
        trans_norm=jnp.ones((D,), jnp.float32),   # JOSIETransformer.norm
        final_norm=jnp.ones((D,), jnp.float32),   # DepthTransformer.norm
        w_text=rnd((D, V)),
        w_sem=rnd((D + 1, C)),
        b_sem=rnd((C,)),
        w_ac=rnd((D, (nac - 1) * C)),             # 7 acoustic heads stacked on N
    )


def turn_to_token(logits, key, temperature=1.0):
    """JAX equivalent of the torch turn_to_token (multinomial over softmax)."""
    if temperature == 0:
        return jnp.argmax(logits, axis=-1, keepdims=True)
    tokens = jax.random.categorical(key, logits / temperature, axis=-1)
    return tokens[..., None]


def depth_transformer_forward(params, temporal_embedding, rng, cfg, use_pallas=True):
    if use_pallas:
        linear, rmsnorm, gated, attn = (
            pallas_linear, pallas_rmsnorm, pallas_gated_mlp, pallas_attention)
    else:
        linear, rmsnorm, gated, attn = (
            ref_linear, ref_rmsnorm, ref_gated_mlp, ref_attention)

    B, L, Dt = temporal_embedding.shape
    D, H = cfg["hidden"], cfg["heads"]
    hd = D // H
    eps = cfg["eps"]

    # input projection
    hidden = linear(temporal_embedding.reshape(B * L, Dt),
                    params["w_in"]).reshape(B, L, D)

    # JOSIETransformer
    x = hidden + params["pos_emb"][:, :L, :]
    for lyr in params["layers"]:
        h = rmsnorm(x.reshape(B * L, D), lyr["attn_norm"], eps)
        qkv = linear(h, lyr["wqkv"])                       # [B*L, 3D]
        q, k, v = jnp.split(qkv, 3, axis=-1)

        def to_heads(t):
            return t.reshape(B, L, H, hd).transpose(0, 2, 1, 3)

        o = attn(to_heads(q), to_heads(k), to_heads(v), hd ** -0.5)
        o = o.transpose(0, 2, 1, 3).reshape(B * L, D)
        x = x + linear(o, lyr["wo"]).reshape(B, L, D)

        h = rmsnorm(x.reshape(B * L, D), lyr["mlp_norm"], eps)
        g = gated(h, lyr["w1"], lyr["w3"])
        x = x + linear(g, lyr["w2"]).reshape(B, L, D)

    x = rmsnorm(x.reshape(B * L, D), params["trans_norm"], eps).reshape(B, L, D)
    x = rmsnorm(x.reshape(B * L, D), params["final_norm"], eps).reshape(B, L, D)

    h0 = x[:, 0]                                           # [B, D]
    k_text, k_sem, k_ac = jax.random.split(rng, 3)

    text_logits = linear(h0, params["w_text"])             # [B, vocab]
    text_token = turn_to_token(text_logits, k_text)[:, None, :]     # [B,1,1]

    # torch concatenates the (integer) token with the float hidden; cast to float.
    semantic_input = jnp.concatenate(
        [h0, text_token[:, 0].astype(h0.dtype)], axis=-1)  # [B, D+1]
    semantic_logits = linear(semantic_input, params["w_sem"], params["b_sem"])
    semantic_token = turn_to_token(semantic_logits, k_sem)[:, None, :]

    ac_logits = linear(h0, params["w_ac"])                 # [B, 7*codebook]
    ac_logits = ac_logits.reshape(B, cfg["n_ac"] - 1, cfg["codebook"])
    ac_tokens = jax.random.categorical(k_ac, ac_logits, axis=-1)[:, None, :]

    return dict(
        text_token=text_token,
        semantic_token=semantic_token,
        acoustic_tokens=ac_tokens,
        text_logits=text_logits,
        semantic_logits=semantic_logits,
        acoustic_logits=ac_logits,
    )


def _rel_err(a, b):
    a = jnp.asarray(a, jnp.float32)
    b = jnp.asarray(b, jnp.float32)
    return float(jnp.linalg.norm(a - b) / (jnp.linalg.norm(b) + 1e-9))


if __name__ == "__main__":
    cfg = dict(
        temporal_hidden=64,   # temporal transformer hidden size (small demo)
        hidden=64,            # depth transformer hidden size
        heads=4,
        layers=2,
        vocab=256,            # text vocab (small demo)
        codebook=256,         # audio codebook size (small demo)
        n_ac=8,               # num_acoustic_quantizers -> 7 acoustic projections
        max_pos=16,
        eps=1e-5,
    )
    B, L = 2, 8

    key = jax.random.PRNGKey(0)
    kp, kx, ks = jax.random.split(key, 3)
    params = init_params(kp, cfg)
    temporal_embedding = jax.random.normal(
        kx, (B, L, cfg["temporal_hidden"]), dtype=jnp.float32)

    out = depth_transformer_forward(params, temporal_embedding, ks, cfg,
                                    use_pallas=True)
    out = jax.block_until_ready(out)

    # Shape checks (match the torch module's returned tuple shapes).
    assert out["text_token"].shape == (B, 1, 1), out["text_token"].shape
    assert out["semantic_token"].shape == (B, 1, 1), out["semantic_token"].shape
    assert out["acoustic_tokens"].shape == (B, 1, cfg["n_ac"] - 1), \
        out["acoustic_tokens"].shape

    # Numerical check of the Pallas path against a pure-JAX f32 reference.
    # bf16 inputs + f32 accumulation => a few-percent tolerance is expected.
    ref = depth_transformer_forward(params, temporal_embedding, ks, cfg,
                                    use_pallas=False)
    for name in ("text_logits", "acoustic_logits"):
        err = _rel_err(out[name], ref[name])
        assert err < 0.06, (name, err)

    # Unit check of the bias GEMM path (semantic projection kernel) on fixed inputs.
    xs = jax.random.normal(jax.random.PRNGKey(1), (B, cfg["hidden"] + 1),
                           dtype=jnp.float32)
    ys = pallas_linear(xs, params["w_sem"], params["b_sem"])
    yr = xs @ params["w_sem"] + params["b_sem"]
    assert _rel_err(ys, yr) < 0.02, _rel_err(ys, yr)

    print("KERNEL_OK")
</pallas_src>

<mosaic_0001>
module attributes {stable_mosaic.version = 11 : i64} {
  func.func @_mm_bias_kernel(%arg0: i32, %arg1: i32, %arg2: memref<16x64xbf16, #tpu.memory_space<vmem>>, %arg3: memref<64x128xbf16, #tpu.memory_space<vmem>>, %arg4: memref<1x128xf32, #tpu.memory_space<vmem>>, %arg5: memref<16x128xf32, #tpu.memory_space<vmem>>) attributes {dimension_semantics = [#tpu.dimension_semantics<parallel>, #tpu.dimension_semantics<parallel>], iteration_bounds = array<i64: 1, 1>, scalar_prefetch = 0 : i64, scratch_operands = 0 : i64, tpu.core_type = #tpu.core_type<tc>, window_params = [{transform_indices = @transform_0, window_bounds = array<i64: 16, 64>}, {transform_indices = @transform_1, window_bounds = array<i64: 64, 128>}, {transform_indices = @transform_2, window_bounds = array<i64: 1, 128>}, {transform_indices = @transform_3, window_bounds = array<i64: 16, 128>}]} {
    %c0 = arith.constant 0 : index
    %c0_0 = arith.constant 0 : index
    %0 = vector.load %arg2[%c0, %c0_0] : memref<16x64xbf16, #tpu.memory_space<vmem>>, vector<16x64xbf16>
    %c0_1 = arith.constant 0 : index
    %c0_2 = arith.constant 0 : index
    %1 = vector.load %arg3[%c0_1, %c0_2] : memref<64x128xbf16, #tpu.memory_space<vmem>>, vector<64x128xbf16>
    %cst = arith.constant dense<0.000000e+00> : vector<16x128xf32>
    %2 = tpu.matmul %0, %1, %cst {dimension_numbers = #tpu.dot_dimension_numbers<[1], [0], [0], [1], [0, 0, 1, 1], [], []>} : vector<16x64xbf16>, vector<64x128xbf16>, vector<16x128xf32> -> vector<16x128xf32>
    %c0_3 = arith.constant 0 : index
    %c0_4 = arith.constant 0 : index
    %3 = vector.load %arg4[%c0_3, %c0_4] : memref<1x128xf32, #tpu.memory_space<vmem>>, vector<1x128xf32>
    %4 = vector.broadcast %3 : vector<1x128xf32> to vector<16x128xf32>
    %5 = arith.addf %2, %4 : vector<16x128xf32>
    %c0_5 = arith.constant 0 : index
    %c0_6 = arith.constant 0 : index
    %6 = vector.load %arg5[%c0_5, %c0_6] : memref<16x128xf32, #tpu.memory_space<vmem>>, vector<16x128xf32>
    tpu.vector_store %arg5[%c0_5, %c0_6], %5 {strides = array<i32>} : memref<16x128xf32, #tpu.memory_space<vmem>>, vector<16x128xf32>,
    return
  }
  func.func @transform_0(%arg0: i32, %arg1: i32) -> (i32, i32) {
    %c0_i32 = arith.constant 0 : i32
    %c0_i32_0 = arith.constant 0 : i32
    return %arg0, %c0_i32 : i32, i32
  }
  func.func @transform_1(%arg0: i32, %arg1: i32) -> (i32, i32) {
    %c0_i32 = arith.constant 0 : i32
    %c0_i32_0 = arith.constant 0 : i32
    return %c0_i32, %arg1 : i32, i32
  }
  func.func @transform_2(%arg0: i32, %arg1: i32) -> (i32, i32) {
    %c0_i32 = arith.constant 0 : i32
    %c0_i32_0 = arith.constant 0 : i32
    return %c0_i32, %arg1 : i32, i32
  }
  func.func @transform_3(%arg0: i32, %arg1: i32) -> (i32, i32) {
    %c0_i32 = arith.constant 0 : i32
    return %arg0, %arg1 : i32, i32
  }
}

</mosaic_0001>

<bundles_post_ra>
// kernel: tpu_custom_call.1
= control target key start
LH: loop header
LB: loop body
LE: loop exit
PB: predicated region body
PF: predicated region fallthrough
CT: control target
= control target key end

     0   :  { %8 = vsyncpa [#allocation3], 0  ;;  %s333_s0 = inlined_call_operand.hbm [shape: bf16[16,64], index: 0, kind: input, shape index: {}]   ;;  %s334_s1 = inlined_call_operand.hbm [shape: bf16[64,128], index: 1, kind: input, shape index: {}]   ;;  %s335_s2 = inlined_call_operand.vmem [shape: f32[1,128], index: 2, kind: input, shape index: {}]   ;;  %s336_s3 = inlined_call_operand.hbm [shape: f32[16,128], index: 3, kind: output, shape index: {}]  }
   0x1   :  { %9 = vsyncpa [#allocation6], 0 }
   0x2   :  { %10 = vsyncpa [#allocation4], 0  ;;  %s265_s12 = smov [#allocation2]   ;;  %s193_s16 = scalar_lea.hbm %s333_s0, 128 }
   0x3   :  { %s16_s13 = sshll.u32 %s265_s12, 4  ;;  %p194_p0 = scmp.ne.s32.totalorder %s333_s0, %s193_s16  ;;  %s17_s13 = int_to_ptr.vmem [resolvable:$true] %s16_s13 }
   0x4   :  { %p197_p1 = scmp.lt.u32.totalorder %s193_s16, %s333_s0 }
   0x6   :  { %p199_p2 = pnand %p197_p1, %p194_p0 }
   0x8   :  { %202 = shalt.err (!%p199_p2)
}
   0x9   :  { %s203_s21 = scalar_lea.vmem %s17_s13, 128  ;;  %p208_p4 = scmp.lt.s32.totalorder %s17_s13, %s17_s13 }
   0xa   :  { %p204_p3 = scmp.ne.s32.totalorder %s17_s13, %s203_s21  ;;  %p209_p5 = scmp.lt.s32.totalorder %s203_s21, %s203_s21 }
   0xc   :  { %p210_p6 = por %p209_p5, %p208_p4 }
   0xe   :  { %p211_p7 = pnand %p210_p6, %p204_p3 }
  0x10   :  { %214 = shalt.err (!%p211_p7)
}
  0x11   :  { %s266_s22 = smov 64   ;;  %s267_s23 = smov 4  }
  0x12   :  { %22 = dma.hbm_to_vmem [thread:$0]  %s333_s0, 128, %s17_s13, [#allocation3], %s266_s22, %s266_s22, %s267_s23  }
  0x13   :  { %s268_s26 = smov [#allocation5]   ;;  %s215_s30 = scalar_lea.hbm %s334_s1, 512 }
  0x14   :  { %s28_s27 = sshll.u32 %s268_s26, 4  ;;  %p216_p8 = scmp.ne.s32.totalorder %s334_s1, %s215_s30  ;;  %s29_s27 = int_to_ptr.vmem [resolvable:$true] %s28_s27 }
  0x15   :  { %p219_p9 = scmp.lt.u32.totalorder %s215_s30, %s334_s1 }
  0x17   :  { %p221_p10 = pnand %p219_p9, %p216_p8 }
  0x19   :  { %224 = shalt.err (!%p221_p10)
}
  0x1a   :  { %s225_s8 = scalar_lea.vmem %s29_s27, 512  ;;  %p230_p12 = scmp.lt.s32.totalorder %s29_s27, %s29_s27 }
  0x1b   :  { %p226_p11 = scmp.ne.s32.totalorder %s29_s27, %s225_s8  ;;  %p231_p13 = scmp.lt.s32.totalorder %s225_s8, %s225_s8 }
  0x1d   :  { %p232_p0 = por %p231_p13, %p230_p12 }
  0x1f   :  { %p233_p1 = pnand %p232_p0, %p226_p11 }
  0x21   :  { %236 = shalt.err (!%p233_p1)
}
  0x22   :  { %34 = dma.hbm_to_vmem [thread:$0]  %s334_s1, 512, %s29_s27, [#allocation6], %s266_s22, %s266_s22, %s267_s23  }
  0x23   :  { %259 = dma.done.wait [#allocation3], 128  }
  0x24   :  { %260 = vsyncadd [#allocation3], 4294967168 }
  0x25   :  { %261 = dma.done.wait [#allocation6], 512  }
  0x26   :  { %262 = vsyncadd [#allocation6], 4294966784  ;;  %v269_v0 = vmov 0.0   ;;  %vm270_vm0 = vmmov 0   ;;  %v188_v1 = vld [vmem:[#allocation5] sm:$0xff]   ;;  %v189_v2 = vld [vmem:[#allocation5 + $0x8] sm:$0xff]  }
  0x27   :  { %167 = vmatprep.subr.bf16.mxu0 %v269_v0  ;;  %175 = vmatprep.mubr.msk.bf16.mxu0 %vm270_vm0, %v269_v0  ;;  %v190_v3 = vld [vmem:[#allocation5 + $0x10] sm:$0xff]   ;;  %v191_v4 = vld [vmem:[#allocation5 + $0x18] sm:$0xff]   ;;  %vm90_vm1 = vcmask 523264   ;;  %s271_s11 = smov [#allocation7]  }
  0x28   :  { %168 = vmatpush3.bf16.msra.mxu0 %v188_v1  ;;  %v192_v5 = vld [vmem:[#allocation2] sm:$0xff]   ;;  %s142_s12 = sshll.u32 %s271_s11, 4  ;;  %s143_s12 = int_to_ptr.vmem [resolvable:$true] %s142_s12 }
  0x29   :  { %169 = vmatprep.subr.bf16.mxu0 %v269_v0  ;;  %v155_v6 = vld [vmem:[%s335_s2] ss:$0 sm:$0xff]  ;;  %s237_s13 = scalar_lea.vmem %s143_s12, 256  ;;  %p242_p3 = scmp.lt.s32.totalorder %s143_s12, %s143_s12 }
  0x2a   :  { %p238_p2 = scmp.ne.s32.totalorder %s143_s12, %s237_s13  ;;  %p243_p4 = scmp.lt.s32.totalorder %s237_s13, %s237_s13 }
  0x2c   :  { %170 = vmatpush3.bf16.msra.mxu0 %v189_v2  ;;  %p244_p5 = por %p243_p4, %p242_p3 }
  0x2d   :  { %171 = vmatprep.subr.bf16.mxu0 %v269_v0 }
  0x2e   :  { %p245_p6 = pnand %p244_p5, %p238_p2 }
  0x30   :  { %172 = vmatpush3.bf16.msra.mxu0 %v190_v3 }
  0x31   :  { %173 = vmatprep.subr.bf16.mxu0 %v269_v0 }
  0x34   :  { %174 = vmatpush3.bf16.msra.mxu0 %v191_v4 }
  0x37   :  { %176 = vmatmul.mubr.msk.bf16.vlgmr.msra.gmra.mrb[0].mxu0 %vm90_vm1, %v192_v5 }
 0x10a   :  { %v128_v7 = vpop.f32.mrb[0].mxu0 }
 0x10b   :  { %v129_v8 = vadd.f32 %v155_v6, %v128_v7  ;;  %v177_v9 = vpop.f32.mrb[1].mxu0 }
 0x10c   :  { %v131_v10 = vpop.f32.mrb[2].mxu0 }
 0x10d   :  { %135 = vst [vmem:[#allocation7] sm:$0xff] %v129_v8  ;;  %v132_v11 = vadd.f32 %v155_v6, %v131_v10  ;;  %v178_v12 = vpop.f32.mrb[3].mxu0 }
 0x10f   :  { %136 = vst [vmem:[#allocation7 + $0x8] sm:$0xff] %v132_v11 }
 0x110   :  { %248 = shalt.err (!%p245_p6)
}
 0x111   :  { %s249_s15 = scalar_lea.hbm %s336_s3, 256 }
 0x112   :  { %p250_p7 = scmp.ne.s32.totalorder %s336_s3, %s249_s15  ;;  %p253_p8 = scmp.lt.u32.totalorder %s249_s15, %s336_s3 }
 0x114   :  { %p255_p9 = pnand %p253_p8, %p250_p7 }
 0x116   :  { %258 = shalt.err (!%p255_p9)
}
 0x117   :  { %s272_s20 = smov 128   ;;  %s273_s21 = smov 8  }
 0x118   :  { %148 = dma.vmem_to_hbm [thread:$0]  %s143_s12, 256, %s336_s3, [#allocation4], %s272_s20, %s272_s20, %s273_s21  }
 0x119   :  { %263 = dma.done.wait [#allocation4], 256  }
 0x11a   :  { %264 = vsyncadd [#allocation4], 4294967040 }
 0x11b   :  { %152 = vsyncpa [#allocation3], 1 }
 0x11c   :  { %153 = vsyncpa [#allocation6], 1 }
 0x11d   :  { %154 = vsyncpa [#allocation4], 1 }

</bundles_post_ra>
